<compile_context>
chip_gen: v6e
topology: v6e:2x2x1
jax: 0.10.0
libtpu: 0.0.40
codegen_flags: <defaults>
</compile_context>

<pallas_src>
import jax
import jax.numpy as jnp
from jax.experimental import pallas as pl
from jax.experimental.pallas import tpu as pltpu

LANES = 128
_TARGET_BLOCK_ELEMS = 512 * 1024  # ~2 MiB f32 per input block (x2 inputs, x2 buffers)


def _dice_stats_kernel(x_ref, y_ref, pt_ref, ps_ref, ts_ref):
    # x_ref / y_ref: (BC, K, 128) -- BC whole channel planes, lane-dense.
    x = x_ref[...].astype(jnp.float32)
    y = y_ref[...].astype(jnp.float32)
    p = jax.nn.sigmoid(x)
    # Per-channel lane partials: VPU elementwise + one sublane reduce per block.
    # The cross-lane (128-wide) reduce is deferred to the JAX epilogue.
    pt_ref[...] = jnp.sum(p * y, axis=1, keepdims=True)  # (BC, 1, 128)
    ps_ref[...] = jnp.sum(p, axis=1, keepdims=True)
    ts_ref[...] = jnp.sum(y, axis=1, keepdims=True)


def dice_loss(logits, labels, smooth=1.0):
    """Matches DiceLoss.forward: mean over (N*C) channels of per-channel dice loss."""
    assert logits.shape == labels.shape and logits.ndim == 4
    N, C, H, W = logits.shape
    NC, HW = N * C, H * W

    # Pad H*W to a multiple of 128 (lane-dense).  Padded logits get a large
    # negative value (sigmoid -> 0) and padded labels get 0, so padding
    # contributes nothing to any of the three per-channel sums.
    hw_pad = pl.cdiv(HW, LANES) * LANES
    x2 = logits.reshape(NC, HW)
    y2 = labels.reshape(NC, HW)  # native dtype, cast happens in-kernel
    if hw_pad != HW:
        x2 = jnp.pad(x2, ((0, 0), (0, hw_pad - HW)), constant_values=-1e30)
        y2 = jnp.pad(y2, ((0, 0), (0, hw_pad - HW)), constant_values=0)

    # Channels per block: as many whole planes as fit the per-block budget.
    # TODO(synk): for very large H*W (>~4M elems/plane) a second reduction grid
    # axis over the K dimension would be needed to keep blocks inside VMEM.
    bc = min(NC, max(1, _TARGET_BLOCK_ELEMS // hw_pad))
    nc_pad = pl.cdiv(NC, bc) * bc
    if nc_pad != NC:
        x2 = jnp.pad(x2, ((0, nc_pad - NC), (0, 0)), constant_values=-1e30)
        y2 = jnp.pad(y2, ((0, nc_pad - NC), (0, 0)), constant_values=0)

    k = hw_pad // LANES
    x3 = x2.reshape(nc_pad, k, LANES)
    y3 = y2.reshape(nc_pad, k, LANES)

    grid = (nc_pad // bc,)
    stat_shape = jax.ShapeDtypeStruct((nc_pad, 1, LANES), jnp.float32)

    in_spec = pl.BlockSpec((bc, k, LANES), lambda i: (i, 0, 0))
    out_spec = pl.BlockSpec((bc, 1, LANES), lambda i: (i, 0, 0))

    pt_part, ps_part, ts_part = pl.pallas_call(
        _dice_stats_kernel,
        out_shape=(stat_shape, stat_shape, stat_shape),
        grid_spec=pltpu.PrefetchScalarGridSpec(
            num_scalar_prefetch=0,
            grid=grid,
            in_specs=[in_spec, in_spec],
            out_specs=[out_spec, out_spec, out_spec],
        ),
        compiler_params=pltpu.CompilerParams(
            dimension_semantics=("parallel",),  # independent blocks -> both TCs on v7x
            vmem_limit_bytes=64 << 20,
        ),
    )(x3, y3)

    # Tiny epilogue: finish the 128-lane reduce and combine the dice ratios.
    inter = jnp.sum(pt_part[:NC, 0, :], axis=-1)
    psum = jnp.sum(ps_part[:NC, 0, :], axis=-1)
    tsum = jnp.sum(ts_part[:NC, 0, :], axis=-1)
    per_channel = 1.0 - (2.0 * inter + smooth) / (psum + tsum + smooth)
    return jnp.mean(per_channel)  # == sum(channel_loss) / (N*C)


def _reference(logits, labels, smooth=1.0):
    p = jax.nn.sigmoid(logits.astype(jnp.float32))
    t = labels.astype(jnp.float32)
    N, C = logits.shape[:2]
    pf = p.reshape(N * C, -1)
    tf = t.reshape(N * C, -1)
    inter = jnp.sum(pf * tf, axis=1)
    per = 1.0 - (2.0 * inter + smooth) / (
        jnp.sum(pf, axis=1) + jnp.sum(tf, axis=1) + smooth
    )
    return jnp.mean(per)


if __name__ == "__main__":
    key = jax.random.PRNGKey(0)
    k1, k2 = jax.random.split(key)

    # NCHW inputs, as the PyTorch module expects.
    N, C, H, W = 2, 4, 16, 16
    logits = jax.random.normal(k1, (N, C, H, W), dtype=jnp.float32) * 2.0
    labels = (jax.random.uniform(k2, (N, C, H, W)) > 0.5).astype(jnp.float32)

    out = jax.block_until_ready(dice_loss(logits, labels))
    ref = jax.block_until_ready(_reference(logits, labels))

    assert jnp.allclose(out, ref, atol=1e-5, rtol=1e-5), (out, ref)
    print("KERNEL_OK")
</pallas_src>

<mosaic_0001>
module attributes {stable_mosaic.version = 11 : i64} {
  func.func @_dice_stats_kernel(%arg0: i32, %arg1: memref<8x2x128xf32, #tpu.memory_space<vmem>>, %arg2: memref<8x2x128xf32, #tpu.memory_space<vmem>>, %arg3: memref<8x1x128xf32, #tpu.memory_space<vmem>>, %arg4: memref<8x1x128xf32, #tpu.memory_space<vmem>>, %arg5: memref<8x1x128xf32, #tpu.memory_space<vmem>>) attributes {dimension_semantics = [#tpu.dimension_semantics<parallel>], iteration_bounds = array<i64: 1>, scalar_prefetch = 0 : i64, scratch_operands = 0 : i64, tpu.core_type = #tpu.core_type<tc>, window_params = [{transform_indices = @transform_0, window_bounds = array<i64: 8, 2, 128>}, {transform_indices = @transform_1, window_bounds = array<i64: 8, 2, 128>}, {transform_indices = @transform_2, window_bounds = array<i64: 8, 1, 128>}, {transform_indices = @transform_3, window_bounds = array<i64: 8, 1, 128>}, {transform_indices = @transform_4, window_bounds = array<i64: 8, 1, 128>}]} {
    %c0 = arith.constant 0 : index
    %c0_0 = arith.constant 0 : index
    %c0_1 = arith.constant 0 : index
    %0 = vector.load %arg1[%c0, %c0_0, %c0_1] : memref<8x2x128xf32, #tpu.memory_space<vmem>>, vector<8x2x128xf32>
    %c0_2 = arith.constant 0 : index
    %c0_3 = arith.constant 0 : index
    %c0_4 = arith.constant 0 : index
    %1 = vector.load %arg2[%c0_2, %c0_3, %c0_4] : memref<8x2x128xf32, #tpu.memory_space<vmem>>, vector<8x2x128xf32>
    %2 = arith.negf %0 : vector<8x2x128xf32>
    %3 = math.exp %2 : vector<8x2x128xf32>
    %cst = arith.constant 1.000000e+00 : f32
    %4 = vector.broadcast %cst : f32 to vector<8x2x128xf32>
    %5 = arith.addf %4, %3 : vector<8x2x128xf32>
    %6 = arith.divf %4, %5 : vector<8x2x128xf32>
    %7 = arith.mulf %6, %1 : vector<8x2x128xf32>
    %cst_5 = arith.constant dense<0.000000e+00> : vector<8x128xf32>
    %8 = vector.multi_reduction <add>, %7, %cst_5 [1] : vector<8x2x128xf32> to vector<8x128xf32>
    %9 = vector.shape_cast %8 : vector<8x128xf32> to vector<8x1x128xf32>
    %c0_6 = arith.constant 0 : index
    %c0_7 = arith.constant 0 : index
    %c0_8 = arith.constant 0 : index
    %10 = vector.load %arg3[%c0_6, %c0_7, %c0_8] : memref<8x1x128xf32, #tpu.memory_space<vmem>>, vector<8x1x128xf32>
    tpu.vector_store %arg3[%c0_6, %c0_7, %c0_8], %9 {strides = array<i32>} : memref<8x1x128xf32, #tpu.memory_space<vmem>>, vector<8x1x128xf32>,
    %cst_9 = arith.constant dense<0.000000e+00> : vector<8x128xf32>
    %11 = vector.multi_reduction <add>, %6, %cst_9 [1] : vector<8x2x128xf32> to vector<8x128xf32>
    %12 = vector.shape_cast %11 : vector<8x128xf32> to vector<8x1x128xf32>
    %c0_10 = arith.constant 0 : index
    %c0_11 = arith.constant 0 : index
    %c0_12 = arith.constant 0 : index
    %13 = vector.load %arg4[%c0_10, %c0_11, %c0_12] : memref<8x1x128xf32, #tpu.memory_space<vmem>>, vector<8x1x128xf32>
    tpu.vector_store %arg4[%c0_10, %c0_11, %c0_12], %12 {strides = array<i32>} : memref<8x1x128xf32, #tpu.memory_space<vmem>>, vector<8x1x128xf32>,
    %cst_13 = arith.constant dense<0.000000e+00> : vector<8x128xf32>
    %14 = vector.multi_reduction <add>, %1, %cst_13 [1] : vector<8x2x128xf32> to vector<8x128xf32>
    %15 = vector.shape_cast %14 : vector<8x128xf32> to vector<8x1x128xf32>
    %c0_14 = arith.constant 0 : index
    %c0_15 = arith.constant 0 : index
    %c0_16 = arith.constant 0 : index
    %16 = vector.load %arg5[%c0_14, %c0_15, %c0_16] : memref<8x1x128xf32, #tpu.memory_space<vmem>>, vector<8x1x128xf32>
    tpu.vector_store %arg5[%c0_14, %c0_15, %c0_16], %15 {strides = array<i32>} : memref<8x1x128xf32, #tpu.memory_space<vmem>>, vector<8x1x128xf32>,
    return
  }
  func.func @transform_0(%arg0: i32) -> (i32, i32, i32) {
    %c0_i32 = arith.constant 0 : i32
    %c0_i32_0 = arith.constant 0 : i32
    %c0_i32_1 = arith.constant 0 : i32
    return %arg0, %c0_i32, %c0_i32_0 : i32, i32, i32
  }
  func.func @transform_1(%arg0: i32) -> (i32, i32, i32) {
    %c0_i32 = arith.constant 0 : i32
    %c0_i32_0 = arith.constant 0 : i32
    %c0_i32_1 = arith.constant 0 : i32
    return %arg0, %c0_i32, %c0_i32_0 : i32, i32, i32
  }
  func.func @transform_2(%arg0: i32) -> (i32, i32, i32) {
    %c0_i32 = arith.constant 0 : i32
    %c0_i32_0 = arith.constant 0 : i32
    %c0_i32_1 = arith.constant 0 : i32
    return %arg0, %c0_i32, %c0_i32_0 : i32, i32, i32
  }
  func.func @transform_3(%arg0: i32) -> (i32, i32, i32) {
    %c0_i32 = arith.constant 0 : i32
    %c0_i32_0 = arith.constant 0 : i32
    %c0_i32_1 = arith.constant 0 : i32
    return %arg0, %c0_i32, %c0_i32_0 : i32, i32, i32
  }
  func.func @transform_4(%arg0: i32) -> (i32, i32, i32) {
    %c0_i32 = arith.constant 0 : i32
    %c0_i32_0 = arith.constant 0 : i32
    %c0_i32_1 = arith.constant 0 : i32
    return %arg0, %c0_i32, %c0_i32_0 : i32, i32, i32
  }
}

</mosaic_0001>

<bundles_post_ra>
// kernel: tpu_custom_call.1
= control target key start
LH: loop header
LB: loop body
LE: loop exit
PB: predicated region body
PF: predicated region fallthrough
CT: control target
= control target key end

     0   :  { %10 = vsyncpa [#allocation3], 0  ;;  %s656_s0 = inlined_call_operand.hbm [shape: f32[8,2,128], index: 0, kind: input, shape index: {}]   ;;  %s657_s1 = inlined_call_operand.hbm [shape: f32[8,2,128], index: 1, kind: input, shape index: {}]   ;;  %s658_s2 = inlined_call_operand.hbm [shape: f32[8,1,128], index: 2, kind: output, shape index: {0}]   ;;  %s659_s3 = inlined_call_operand.hbm [shape: f32[8,1,128], index: 3, kind: output, shape index: {1}]   ;;  %s660_s4 = inlined_call_operand.hbm [shape: f32[8,1,128], index: 4, kind: output, shape index: {2}]  }
   0x1   :  { %11 = vsyncpa [#allocation6], 0 }
   0x2   :  { %12 = vsyncpa [#allocation4], 0 }
   0x3   :  { %13 = vsyncpa [#allocation9], 0  ;;  %s515_s15 = smov [#allocation2]  }
   0x4   :  { %s19_s16 = sshll.u32 %s515_s15, 4  ;;  %s20_s16 = int_to_ptr.vmem [resolvable:$true] %s19_s16 }
   0x5   :  { %s415_s17 = scalar_lea.vmem %s20_s16, 256  ;;  %p420_p1 = scmp.lt.s32.totalorder %s20_s16, %s20_s16 }
   0x6   :  { %p416_p0 = scmp.ne.s32.totalorder %s20_s16, %s415_s17  ;;  %p421_p2 = scmp.lt.s32.totalorder %s415_s17, %s415_s17 }
   0x8   :  { %p422_p3 = por %p421_p2, %p420_p1 }
   0xa   :  { %p423_p4 = pnand %p422_p3, %p416_p0 }
   0xc   :  { %426 = shalt.err (!%p423_p4)
}
   0xd   :  { %s516_s18 = smov 32   ;;  %s517_s19 = smov 2  }
   0xe   :  { %25 = dma.hbm_to_vmem [thread:$0]  %s656_s0, 256, %s20_s16, [#allocation3], %s516_s18, %s516_s18, %s517_s19  }
   0xf   :  { %s518_s22 = smov [#allocation5]  }
  0x10   :  { %s31_s23 = sshll.u32 %s518_s22, 4  ;;  %s32_s23 = int_to_ptr.vmem [resolvable:$true] %s31_s23 }
  0x11   :  { %s435_s24 = scalar_lea.vmem %s32_s23, 256  ;;  %p440_p6 = scmp.lt.s32.totalorder %s32_s23, %s32_s23 }
  0x12   :  { %p436_p5 = scmp.ne.s32.totalorder %s32_s23, %s435_s24  ;;  %p441_p7 = scmp.lt.s32.totalorder %s435_s24, %s435_s24 }
  0x14   :  { %p442_p8 = por %p441_p7, %p440_p6 }
  0x16   :  { %p443_p9 = pnand %p442_p8, %p436_p5 }
  0x18   :  { %446 = shalt.err (!%p443_p9)
}
  0x19   :  { %37 = dma.hbm_to_vmem [thread:$0]  %s657_s1, 256, %s32_s23, [#allocation6], %s516_s18, %s516_s18, %s517_s19  }
  0x1a   :  { %507 = dma.done.wait [#allocation3], 256  }
  0x1b   :  { %508 = vsyncadd [#allocation3], 4294967040 }
  0x1c   :  { %509 = dma.done.wait [#allocation6], 256  }
  0x1d   :  { %510 = vsyncadd [#allocation6], 4294967040  ;;  %v44_v0 = vld [vmem:[#allocation2] sm:$0x3]  ;;  %v45_v1 = vld [vmem:[#allocation2 + $0x2] sm:$0x3] }
  0x1e   :  { %v46_v2 = vld [vmem:[#allocation2 + $0x4] sm:$0x3]  ;;  %v358_v3 = vmul.f32 -1.442695, %v44_v0  ;;  %v359_v4 = vmul.f32 -1.442695, %v45_v1 }
  0x1f   :  { %v360_v5 = vmul.f32 -1.442695, %v46_v2  ;;  %v47_v6 = vld [vmem:[#allocation2 + $0x6] sm:$0x3]  ;;  %v48_v7 = vld [vmem:[#allocation2 + $0x8] sm:$0x3] }
  0x20   :  { %v49_v8 = vld [vmem:[#allocation2 + $0xa] sm:$0x3]  ;;  %375 = vpow2.f32 %v358_v3  ;;  %v361_v9 = vmul.f32 -1.442695, %v47_v6  ;;  %v362_v10 = vmul.f32 -1.442695, %v48_v7 }
  0x21   :  { %377 = vpow2.f32 %v359_v4  ;;  %v363_v11 = vmul.f32 -1.442695, %v49_v8  ;;  %v50_v12 = vld [vmem:[#allocation2 + $0xc] sm:$0x3]  ;;  %v51_v13 = vld [vmem:[#allocation2 + $0xe] sm:$0x3] }
  0x22   :  { %vm116_vm0 = vcmask 1041408   ;;  %379 = vpow2.f32 %v360_v5  ;;  %v364_v14 = vmul.f32 -1.442695, %v50_v12  ;;  %v365_v15 = vmul.f32 -1.442695, %v51_v13  ;;  %s519_s0 = smov [#allocation8]  }
  0x23   :  { %381 = vpow2.f32 %v361_v9  ;;  %v555_v16 = vld [vmem:[#allocation5] sm:$0x3]  ;;  %v557_v17 = vld [vmem:[#allocation5 + $0x2] sm:$0x3]  ;;  %v559_v18 = vld [vmem:[#allocation5 + $0x4] sm:$0x3] }
  0x24   :  { %383 = vpow2.f32 %v362_v10  ;;  %v561_v19 = vld [vmem:[#allocation5 + $0x6] sm:$0x3]  ;;  %v563_v20 = vld [vmem:[#allocation5 + $0x8] sm:$0x3]  ;;  %v245_v21 = vsel %vm116_vm0, %v555_v16, 0.0  ;;  %v252_v22 = vsel %vm116_vm0, %v557_v17, 0.0 }
  0x25   :  { %385 = vpow2.f32 %v363_v11  ;;  %v259_v23 = vsel %vm116_vm0, %v559_v18, 0.0  ;;  %v571_v24 = vld [vmem:[#allocation5 + $0xa] sm:$0x3]  ;;  %v246_v25 = vrot.slane %v245_v21, 4  ;;  %v253_v26 = vrot.slane %v252_v22, 4  ;;  %s326_s1 = sshll.u32 %s519_s0, 4  ;;  %s327_s1 = int_to_ptr.vmem [resolvable:$true] %s326_s1 }
  0x26   :  { %387 = vpow2.f32 %v364_v14  ;;  %v260_v27 = vrot.slane %v259_v23, 4  ;;  %v266_v28 = vsel %vm116_vm0, %v561_v19, 0.0  ;;  %v273_v29 = vsel %vm116_vm0, %v563_v20, 0.0  ;;  %v579_v31 = vld [vmem:[#allocation5 + $0xc] sm:$0x3]  ;;  %s520_s27 = smov [#allocation10]   ;;  %p452_p11 = scmp.lt.s32.totalorder %s327_s1, %s327_s1 }
  0x27   :  { %389 = vpow2.f32 %v365_v15  ;;  %v280_v30 = vsel %vm116_vm0, %v571_v24, 0.0  ;;  %v581_v32 = vld [vmem:[#allocation5 + $0xe] sm:$0x3]  ;;  %v247_v33 = vadd.f32 %v246_v25, %v245_v21  ;;  %v254_v34 = vadd.f32 %v253_v26, %v252_v22  ;;  %s338_s28 = sshll.u32 %s520_s27, 4  ;;  %s447_s29 = scalar_lea.vmem %s327_s1, 128  ;;  %s628_s28 = int_to_ptr.vmem [resolvable:$true] %s338_s28 }
  0x28   :  { %v261_v35 = vadd.f32 %v260_v27, %v259_v23  ;;  %v267_v36 = vrot.slane %v266_v28, 4  ;;  %v274_v37 = vrot.slane %v273_v29, 4  ;;  %v281_v38 = vrot.slane %v280_v30, 4  ;;  %p448_p10 = scmp.ne.s32.totalorder %s327_s1, %s447_s29  ;;  %p453_p12 = scmp.lt.s32.totalorder %s447_s29, %s447_s29 }
  0x29   :  { %v287_v39 = vsel %vm116_vm0, %v579_v31, 0.0  ;;  %v294_v40 = vsel %vm116_vm0, %v581_v32, 0.0  ;;  %v248_v41 = vrot.slane %v247_v33, 2  ;;  %v255_v42 = vrot.slane %v254_v34, 2 }
  0x2a   :  { %v262_v43 = vrot.slane %v261_v35, 2  ;;  %v268_v44 = vadd.f32 %v267_v36, %v266_v28  ;;  %v275_v45 = vadd.f32 %v274_v37, %v273_v29  ;;  %v282_v46 = vadd.f32 %v281_v38, %v280_v30  ;;  %p454_p13 = por %p453_p12, %p452_p11 }
  0x2b   :  { %v288_v47 = vrot.slane %v287_v39, 4  ;;  %v295_v48 = vrot.slane %v294_v40, 4  ;;  %v249_v49 = vadd.f32 %v248_v41, %v247_v33  ;;  %v256_v50 = vadd.f32 %v255_v42, %v254_v34 }
  0x2c   :  { %v263_v51 = vadd.f32 %v262_v43, %v261_v35  ;;  %v269_v52 = vrot.slane %v268_v44, 2  ;;  %v276_v54 = vrot.slane %v275_v45, 2  ;;  %v283_v55 = vrot.slane %v282_v46, 2  ;;  %p455_p0 = pnand %p454_p13, %p448_p10 }
  0x2d   :  { %v376_v53 = vpop.eup %375  ;;  %v289_v56 = vadd.f32 %v288_v47, %v287_v39  ;;  %v296_v57 = vadd.f32 %v295_v48, %v294_v40  ;;  %v250_v60 = vrot.slane %v249_v49, 1  ;;  %v257_v61 = vrot.slane %v256_v50, 1 }
  0x2e   :  { %v378_v58 = vpop.eup %377  ;;  %v84_v59 = vadd.f32 1.0, %v376_v53  ;;  %v264_v62 = vrot.slane %v263_v51, 1  ;;  %v270_v1 = vadd.f32 %v269_v52, %v268_v44  ;;  %v277_v2 = vadd.f32 %v276_v54, %v275_v45 }
  0x2f   :  { %v380_v63 = vpop.eup %379  ;;  %v85_v0 = vadd.f32 1.0, %v378_v58  ;;  %v284_v3 = vadd.f32 %v283_v55, %v282_v46  ;;  %v251_v6 = vadd.f32 %v250_v60, %v249_v49  ;;  %v258_v7 = vadd.f32 %v257_v61, %v256_v50 }
  0x30   :  { %v382_v4 = vpop.eup %381  ;;  %391 = vrcp.f32 %v84_v59  ;;  %v86_v5 = vadd.f32 1.0, %v380_v63  ;;  %v265_v10 = vadd.f32 %v264_v62, %v263_v51  ;;  %v271_v11 = vrot.slane %v270_v1, 1 }
  0x31   :  { %v384_v8 = vpop.eup %383  ;;  %393 = vrcp.f32 %v85_v0  ;;  %v87_v9 = vadd.f32 1.0, %v382_v4  ;;  %301 = vst [vmem:[#allocation10] sm:$0x1] %v251_v6  ;;  %302 = vst [vmem:[#allocation10 + $0x1] sm:$0x1] %v258_v7  ;;  %v278_v14 = vrot.slane %v277_v2, 1 }
  0x32   :  { %v386_v12 = vpop.eup %385  ;;  %395 = vrcp.f32 %v86_v5  ;;  %v88_v13 = vadd.f32 1.0, %v384_v8  ;;  %v285_v15 = vrot.slane %v284_v3, 1  ;;  %303 = vst [vmem:[#allocation10 + $0x2] sm:$0x1] %v265_v10  ;;  %v272_v23 = vadd.f32 %v271_v11, %v270_v1 }
  0x33   :  { %v388_v21 = vpop.eup %387  ;;  %397 = vrcp.f32 %v87_v9  ;;  %v89_v22 = vadd.f32 1.0, %v386_v12  ;;  %v290_v25 = vrot.slane %v289_v56, 2  ;;  %v279_v28 = vadd.f32 %v278_v14, %v277_v2 }
  0x34   :  { %v390_v26 = vpop.eup %389  ;;  %399 = vrcp.f32 %v88_v13  ;;  %v90_v27 = vadd.f32 1.0, %v388_v21  ;;  %v286_v29 = vadd.f32 %v285_v15, %v284_v3  ;;  %304 = vst [vmem:[#allocation10 + $0x3] sm:$0x1] %v272_v23  ;;  %v297_v34 = vrot.slane %v296_v57, 2 }
  0x35   :  { %401 = vrcp.f32 %v89_v22  ;;  %v91_v30 = vadd.f32 1.0, %v390_v26  ;;  %v291_v33 = vadd.f32 %v290_v25, %v289_v56  ;;  %305 = vst [vmem:[#allocation10 + $0x4] sm:$0x1] %v279_v28 }
  0x36   :  { %403 = vrcp.f32 %v90_v27  ;;  %306 = vst [vmem:[#allocation10 + $0x5] sm:$0x1] %v286_v29  ;;  %v298_v36 = vadd.f32 %v297_v34, %v296_v57 }
  0x37   :  { %405 = vrcp.f32 %v91_v30  ;;  %v292_v35 = vrot.slane %v291_v33, 1 }
  0x38   :  { %v299_v38 = vrot.slane %v298_v36, 1 }
  0x39   :  { %v293_v37 = vadd.f32 %v292_v35, %v291_v33 }
  0x3a   :  { %v300_v39 = vadd.f32 %v299_v38, %v298_v36 }
  0x3b   :  { %307 = vst [vmem:[#allocation10 + $0x6] sm:$0x1] %v293_v37 }
  0x3c   :  { %308 = vst [vmem:[#allocation10 + $0x7] sm:$0x1] %v300_v39 }
  0x3d   :  { %v392_v40 = vpop.eup %391 }
  0x3e   :  { %v394_v41 = vpop.eup %393  ;;  %v181_v42 = vsel %vm116_vm0, %v392_v40, 0.0  ;;  %v108_v43 = vmul.f32 %v392_v40, %v555_v16 }
  0x3f   :  { %v396_v44 = vpop.eup %395  ;;  %v182_v45 = vrot.slane %v181_v42, 4  ;;  %v188_v46 = vsel %vm116_vm0, %v394_v41, 0.0  ;;  %v109_v47 = vmul.f32 %v394_v41, %v557_v17 }
  0x40   :  { %v591_v48 = vpop.eup %397  ;;  %v189_v49 = vrot.slane %v188_v46, 4  ;;  %v195_v50 = vsel %vm116_vm0, %v396_v44, 0.0  ;;  %v117_v51 = vsel %vm116_vm0, %v108_v43, 0.0  ;;  %v110_v52 = vmul.f32 %v396_v44, %v559_v18 }
  0x41   :  { %v596_v53 = vpop.eup %399  ;;  %v183_v54 = vadd.f32 %v182_v45, %v181_v42  ;;  %v196_v55 = vrot.slane %v195_v50, 4  ;;  %v202_v16 = vsel %vm116_vm0, %v591_v48, 0.0  ;;  %v118_v56 = vrot.slane %v117_v51, 4 }
  0x42   :  { %v600_v57 = vpop.eup %401  ;;  %v190_v17 = vadd.f32 %v189_v49, %v188_v46  ;;  %v203_v58 = vrot.slane %v202_v16, 4  ;;  %v209_v59 = vsel %vm116_vm0, %v596_v53, 0.0  ;;  %v124_v60 = vsel %vm116_vm0, %v109_v47, 0.0 }
  0x43   :  { %v605_v61 = vpop.eup %403  ;;  %v184_v18 = vrot.slane %v183_v54, 2  ;;  %v197_v62 = vadd.f32 %v196_v55, %v195_v50  ;;  %v210_v63 = vrot.slane %v209_v59, 4  ;;  %v216_v0 = vsel %vm116_vm0, %v600_v57, 0.0 }
  0x44   :  { %v609_v1 = vpop.eup %405  ;;  %v191_v2 = vrot.slane %v190_v17, 2  ;;  %v204_v3 = vadd.f32 %v203_v58, %v202_v16  ;;  %v217_v4 = vrot.slane %v216_v0, 4  ;;  %v223_v5 = vsel %vm116_vm0, %v605_v61, 0.0 }
  0x45   :  { %v185_v6 = vadd.f32 %v184_v18, %v183_v54  ;;  %v198_v7 = vrot.slane %v197_v62, 2  ;;  %v211_v8 = vadd.f32 %v210_v63, %v209_v59  ;;  %v224_v9 = vrot.slane %v223_v5, 4 }
  0x46   :  { %v192_v10 = vadd.f32 %v191_v2, %v190_v17  ;;  %v205_v11 = vrot.slane %v204_v3, 2  ;;  %v218_v12 = vadd.f32 %v217_v4, %v216_v0  ;;  %v230_v13 = vsel %vm116_vm0, %v609_v1, 0.0 }
  0x47   :  { %v186_v14 = vrot.slane %v185_v6, 1  ;;  %v199_v15 = vadd.f32 %v198_v7, %v197_v62  ;;  %v212_v21 = vrot.slane %v211_v8, 2  ;;  %v225_v22 = vadd.f32 %v224_v9, %v223_v5 }
  0x48   :  { %v193_v23 = vrot.slane %v192_v10, 1  ;;  %v206_v25 = vadd.f32 %v205_v11, %v204_v3  ;;  %v219_v26 = vrot.slane %v218_v12, 2  ;;  %v231_v27 = vrot.slane %v230_v13, 4 }
  0x49   :  { %v187_v28 = vadd.f32 %v186_v14, %v185_v6  ;;  %v200_v29 = vrot.slane %v199_v15, 1  ;;  %v213_v30 = vadd.f32 %v212_v21, %v211_v8  ;;  %v226_v33 = vrot.slane %v225_v22, 2 }
  0x4a   :  { %v194_v34 = vadd.f32 %v193_v23, %v192_v10  ;;  %v207_v35 = vrot.slane %v206_v25, 1  ;;  %v220_v36 = vadd.f32 %v219_v26, %v218_v12  ;;  %v232_v37 = vadd.f32 %v231_v27, %v230_v13 }
  0x4b   :  { %237 = vst [vmem:[#allocation8] sm:$0x1] %v187_v28  ;;  %v201_v38 = vadd.f32 %v200_v29, %v199_v15  ;;  %v214_v39 = vrot.slane %v213_v30, 1  ;;  %v227_v40 = vadd.f32 %v226_v33, %v225_v22  ;;  %v119_v41 = vadd.f32 %v118_v56, %v117_v51 }
  0x4c   :  { %238 = vst [vmem:[#allocation8 + $0x1] sm:$0x1] %v194_v34  ;;  %v208_v42 = vadd.f32 %v207_v35, %v206_v25  ;;  %v221_v43 = vrot.slane %v220_v36, 1  ;;  %v233_v44 = vrot.slane %v232_v37, 2  ;;  %v125_v45 = vrot.slane %v124_v60, 4 }
  0x4d   :  { %239 = vst [vmem:[#allocation8 + $0x2] sm:$0x1] %v201_v38  ;;  %v215_v46 = vadd.f32 %v214_v39, %v213_v30  ;;  %v228_v47 = vrot.slane %v227_v40, 1  ;;  %v120_v49 = vrot.slane %v119_v41, 2  ;;  %v131_v50 = vsel %vm116_vm0, %v110_v52, 0.0 }
  0x4e   :  { %240 = vst [vmem:[#allocation8 + $0x3] sm:$0x1] %v208_v42  ;;  %v222_v54 = vadd.f32 %v221_v43, %v220_v36  ;;  %v234_v55 = vadd.f32 %v233_v44, %v232_v37  ;;  %v126_v16 = vadd.f32 %v125_v45, %v124_v60  ;;  %v132_v17 = vrot.slane %v131_v50, 4 }
  0x4f   :  { %241 = vst [vmem:[#allocation8 + $0x4] sm:$0x1] %v215_v46  ;;  %v229_v58 = vadd.f32 %v228_v47, %v227_v40  ;;  %v121_v59 = vadd.f32 %v120_v49, %v119_v41  ;;  %v111_v51 = vmul.f32 %v591_v48, %v561_v19  ;;  %v112_v56 = vmul.f32 %v596_v53, %v563_v20 }
  0x50   :  { %242 = vst [vmem:[#allocation8 + $0x5] sm:$0x1] %v222_v54  ;;  %v235_v18 = vrot.slane %v234_v55, 1  ;;  %v127_v62 = vrot.slane %v126_v16, 2  ;;  %v133_v52 = vadd.f32 %v132_v17, %v131_v50  ;;  %v113_v63 = vmul.f32 %v600_v57, %v571_v24 }
  0x51   :  { %243 = vst [vmem:[#allocation8 + $0x6] sm:$0x1] %v229_v58  ;;  %v122_v60 = vrot.slane %v121_v59, 1  ;;  %v138_v0 = vsel %vm116_vm0, %v111_v51, 0.0  ;;  %v145_v19 = vsel %vm116_vm0, %v112_v56, 0.0  ;;  %v114_v20 = vmul.f32 %v605_v61, %v579_v31 }
  0x52   :  { %v236_v48 = vadd.f32 %v235_v18, %v234_v55  ;;  %v128_v53 = vadd.f32 %v127_v62, %v126_v16  ;;  %v134_v2 = vrot.slane %v133_v52, 2  ;;  %v139_v3 = vrot.slane %v138_v0, 4 }
  0x53   :  { %v123_v4 = vadd.f32 %v122_v60, %v121_v59  ;;  %v146_v5 = vrot.slane %v145_v19, 4  ;;  %v152_v24 = vsel %vm116_vm0, %v113_v63, 0.0  ;;  %v159_v57 = vsel %vm116_vm0, %v114_v20, 0.0 }
  0x54   :  { %244 = vst [vmem:[#allocation8 + $0x7] sm:$0x1] %v236_v48  ;;  %v129_v6 = vrot.slane %v128_v53, 1  ;;  %v135_v7 = vadd.f32 %v134_v2, %v133_v52  ;;  %v140_v8 = vadd.f32 %v139_v3, %v138_v0  ;;  %v153_v9 = vrot.slane %v152_v24, 4 }
  0x55   :  { %173 = vst [vmem:[#allocation7] sm:$0x1] %v123_v4  ;;  %v147_v31 = vadd.f32 %v146_v5, %v145_v19  ;;  %v160_v61 = vrot.slane %v159_v57, 4  ;;  %v115_v10 = vmul.f32 %v609_v1, %v581_v32 }
  0x56   :  { %458 = shalt.err (!%p455_p0)
}
  0x57   :  { %s521_s30 = smov 16   ;;  %s522_s5 = smov 1   ;;  %v130_v32 = vadd.f32 %v129_v6, %v128_v53  ;;  %v136_v1 = vrot.slane %v135_v7, 1  ;;  %v141_v11 = vrot.slane %v140_v8, 2  ;;  %v154_v12 = vadd.f32 %v153_v9, %v152_v24 }
  0x58   :  { %332 = dma.vmem_to_hbm [thread:$0]  %s327_s1, 128, %s659_s3, [#allocation9], %s521_s30, %s521_s30, %s522_s5  }
  0x59   :  { %s467_s8 = scalar_lea.vmem %s628_s28, 128  ;;  %p472_p2 = scmp.lt.s32.totalorder %s628_s28, %s628_s28 }
  0x5a   :  { %p468_p1 = scmp.ne.s32.totalorder %s628_s28, %s467_s8  ;;  %p473_p3 = scmp.lt.s32.totalorder %s467_s8, %s467_s8 }
  0x5c   :  { %p474_p4 = por %p473_p3, %p472_p2 }
  0x5e   :  { %p475_p5 = pnand %p474_p4, %p468_p1 }
  0x60   :  { %478 = shalt.err (!%p475_p5)
}
  0x61   :  { %344 = dma.vmem_to_hbm [thread:$0]  %s628_s28, 128, %s660_s4, [#allocation9], %s521_s30, %s521_s30, %s522_s5   ;;  %v148_v13 = vrot.slane %v147_v31, 2  ;;  %v161_v14 = vadd.f32 %v160_v61, %v159_v57  ;;  %v166_v15 = vsel %vm116_vm0, %v115_v10, 0.0  ;;  %174 = vst [vmem:[#allocation7 + $0x1] sm:$0x1] %v130_v32  ;;  %v137_v21 = vadd.f32 %v136_v1, %v135_v7 }
  0x62   :  { %v142_v22 = vadd.f32 %v141_v11, %v140_v8  ;;  %v155_v23 = vrot.slane %v154_v12, 2  ;;  %v167_v25 = vrot.slane %v166_v15, 4  ;;  %s523_s3 = smov [#allocation7]  }
  0x63   :  { %v149_v26 = vadd.f32 %v148_v13, %v147_v31  ;;  %v162_v27 = vrot.slane %v161_v14, 2  ;;  %175 = vst [vmem:[#allocation7 + $0x2] sm:$0x1] %v137_v21  ;;  %s314_s4 = sshll.u32 %s523_s3, 4  ;;  %s315_s4 = int_to_ptr.vmem [resolvable:$true] %s314_s4 }
  0x64   :  { %v143_v28 = vrot.slane %v142_v22, 1  ;;  %v156_v29 = vadd.f32 %v155_v23, %v154_v12  ;;  %v168_v30 = vadd.f32 %v167_v25, %v166_v15  ;;  %s487_s11 = scalar_lea.vmem %s315_s4, 128  ;;  %p492_p7 = scmp.lt.s32.totalorder %s315_s4, %s315_s4 }
  0x65   :  { %v150_v33 = vrot.slane %v149_v26, 1  ;;  %v163_v34 = vadd.f32 %v162_v27, %v161_v14  ;;  %p488_p6 = scmp.ne.s32.totalorder %s315_s4, %s487_s11  ;;  %p493_p8 = scmp.lt.s32.totalorder %s487_s11, %s487_s11 }
  0x66   :  { %v144_v35 = vadd.f32 %v143_v28, %v142_v22  ;;  %v157_v36 = vrot.slane %v156_v29, 1  ;;  %v169_v37 = vrot.slane %v168_v30, 2 }
  0x67   :  { %v151_v38 = vadd.f32 %v150_v33, %v149_v26  ;;  %v164_v39 = vrot.slane %v163_v34, 1  ;;  %p494_p9 = por %p493_p8, %p492_p7 }
  0x68   :  { %176 = vst [vmem:[#allocation7 + $0x3] sm:$0x1] %v144_v35  ;;  %v158_v40 = vadd.f32 %v157_v36, %v156_v29  ;;  %v170_v41 = vadd.f32 %v169_v37, %v168_v30 }
  0x69   :  { %177 = vst [vmem:[#allocation7 + $0x4] sm:$0x1] %v151_v38  ;;  %v165_v42 = vadd.f32 %v164_v39, %v163_v34  ;;  %p495_p10 = pnand %p494_p9, %p488_p6 }
  0x6a   :  { %178 = vst [vmem:[#allocation7 + $0x5] sm:$0x1] %v158_v40  ;;  %v171_v43 = vrot.slane %v170_v41, 1 }
  0x6b   :  { %179 = vst [vmem:[#allocation7 + $0x6] sm:$0x1] %v165_v42 }
  0x6c   :  { %v172_v44 = vadd.f32 %v171_v43, %v170_v41 }
  0x6e   :  { %180 = vst [vmem:[#allocation7 + $0x7] sm:$0x1] %v172_v44 }
  0x6f   :  { %498 = shalt.err (!%p495_p10)
}
  0x70   :  { %320 = dma.vmem_to_hbm [thread:$0]  %s315_s4, 128, %s658_s2, [#allocation4], %s521_s30, %s521_s30, %s522_s5  }
  0x71   :  { %511 = dma.done.wait [#allocation4], 128  }
  0x72   :  { %512 = vsyncadd [#allocation4], 4294967168 }
  0x73   :  { %513 = dma.done.wait [#allocation9], 256  }
  0x74   :  { %514 = vsyncadd [#allocation9], 4294967040 }
  0x75   :  { %354 = vsyncpa [#allocation3], 1 }
  0x76   :  { %355 = vsyncpa [#allocation6], 1 }
  0x77   :  { %356 = vsyncpa [#allocation4], 1 }
  0x78   :  { %357 = vsyncpa [#allocation9], 1 }

</bundles_post_ra>
